<compile_context>
chip_gen: v7x
topology: tpu7x:2x2x1
jax: 0.10.0
libtpu: 0.0.40
codegen_flags: <defaults>
</compile_context>

<pallas_src>
import jax
import jax.numpy as jnp
from jax.experimental import pallas as pl
from jax.experimental.pallas import tpu as pltpu

NC_HIDDEN = 128        # hidden width of fc_stack, fixed by the torch module
_TILE_B = 256          # batch tile for the gridded (large-batch) path
_GRIDLESS_MAX_B = 512  # at/below this padded batch, use the single-shot path


def _l2_normalize(v, eps=1e-12):
    # torch.nn.functional.normalize(v, dim=1): v / max(||v||_2, eps)
    n = jnp.sqrt(jnp.sum(v * v, axis=1, keepdims=True))
    return v / jnp.maximum(n, eps)


def _cross(a, b):
    a0, a1, a2 = a[:, 0:1], a[:, 1:2], a[:, 2:3]
    b0, b1, b2 = b[:, 0:1], b[:, 1:2], b[:, 2:3]
    return jnp.concatenate(
        [a1 * b2 - a2 * b1, a2 * b0 - a0 * b2, a0 * b1 - a1 * b0], axis=1)


def _pose_kernel(feat_ref, wslab_ref, hslab_ref, depth_ref, out_ref):
    f = feat_ref[...]                      # (B_tile, nc_input)
    nc_in = f.shape[1]

    def lrelu(v):  # LeakyReLU(0.1), as used in fc_stack(..., use_bn=False)
        return jnp.where(v > 0, v, 0.1 * v)

    # ---- fc_stack weights / biases: all static slices of one VMEM slab ----
    w0 = wslab_ref[0:nc_in, :]
    w1 = wslab_ref[nc_in:nc_in + NC_HIDDEN, :]
    w2 = wslab_ref[nc_in + NC_HIDDEN:nc_in + 2 * NC_HIDDEN, :]
    boff = nc_in + 2 * NC_HIDDEN
    b0 = wslab_ref[boff:boff + 1, :]
    b1 = wslab_ref[boff + 1:boff + 2, :]
    b2 = wslab_ref[boff + 2:boff + 3, :]

    h = lrelu(jnp.dot(f, w0, preferred_element_type=jnp.float32) + b0)
    h = lrelu(jnp.dot(h, w1, preferred_element_type=jnp.float32) + b1)
    h = lrelu(jnp.dot(h, w2, preferred_element_type=jnp.float32) + b2)

    # ---- heads: two packed 8-lane matmuls instead of four width-3 ones ----
    w_rot = hslab_ref[0:NC_HIDDEN, 0:8]                 # [wrx | wry | pad]
    w_ts = hslab_ref[0:nc_in, 8:16]                     # [wt  | ws  | pad]
    b_rot = hslab_ref[NC_HIDDEN:NC_HIDDEN + 1, 0:8]     # brx+x_off | bry+y_off
    b_ts = hslab_ref[NC_HIDDEN:NC_HIDDEN + 1, 8:16]     # bt | bs

    r = jnp.dot(h, w_rot, preferred_element_type=jnp.float32) + b_rot   # (B,8)
    ts = jnp.dot(f, w_ts, preferred_element_type=jnp.float32) + b_ts    # (B,8)

    x = r[:, 0:3]
    y = r[:, 3:6]
    t = ts[:, 0:3]
    s = ts[:, 3:6]

    # 6D -> rotation matrix (Gram-Schmidt), exactly as the torch code.
    x = _l2_normalize(x)
    z = _l2_normalize(_cross(x, y))
    y = _l2_normalize(_cross(z, x))

    # trans post-processing: first two coords * 0.1, depth + offset
    depth = depth_ref[0]
    t = jnp.concatenate([t[:, 0:2] * 0.1, t[:, 2:3] + depth], axis=1)

    # scale_pred_layer (use_scale=True)
    s = s * 0.1 + 1.0

    # Single lane-dense output: rot rows (x,y,z) 0:9, trans 9:12, scale 12:15.
    pad = jnp.zeros((f.shape[0], 1), jnp.float32)
    out_ref[...] = jnp.concatenate([x, y, z, t, s, pad], axis=1)


def pack_pose_params(params):
    """Pack all PosePredictor params into two contiguous slabs (done once)."""
    nc_in = params["w0"].shape[0]
    assert nc_in <= NC_HIDDEN, "packing layout assumes nc_input <= 128"
    f32 = jnp.float32

    # slab 1: fc_stack weights + biases stacked on rows, lane width 128.
    rows = nc_in + 2 * NC_HIDDEN + 3
    rows_pad = ((rows + 7) // 8) * 8
    wslab = jnp.zeros((rows_pad, NC_HIDDEN), f32)
    wslab = wslab.at[0:nc_in].set(params["w0"].astype(f32))
    wslab = wslab.at[nc_in:nc_in + NC_HIDDEN].set(params["w1"].astype(f32))
    wslab = wslab.at[nc_in + NC_HIDDEN:nc_in + 2 * NC_HIDDEN].set(
        params["w2"].astype(f32))
    boff = nc_in + 2 * NC_HIDDEN
    wslab = wslab.at[boff].set(params["b0"][0].astype(f32))
    wslab = wslab.at[boff + 1].set(params["b1"][0].astype(f32))
    wslab = wslab.at[boff + 2].set(params["b2"][0].astype(f32))

    # slab 2: all width-3 heads, biases and rotation offsets, 16 lanes wide.
    hslab = jnp.zeros((NC_HIDDEN + 8, 16), f32)
    hslab = hslab.at[0:NC_HIDDEN, 0:3].set(params["wrx"].astype(f32))
    hslab = hslab.at[0:NC_HIDDEN, 3:6].set(params["wry"].astype(f32))
    hslab = hslab.at[0:nc_in, 8:11].set(params["wt"].astype(f32))
    hslab = hslab.at[0:nc_in, 11:14].set(params["ws"].astype(f32))
    # fold the fixed rotation offsets into the rot-head bias (exact).
    hslab = hslab.at[NC_HIDDEN, 0:3].set(
        (params["brx"] + params["x_offset"])[0].astype(f32))
    hslab = hslab.at[NC_HIDDEN, 3:6].set(
        (params["bry"] + params["y_offset"])[0].astype(f32))
    hslab = hslab.at[NC_HIDDEN, 8:11].set(params["bt"][0].astype(f32))
    hslab = hslab.at[NC_HIDDEN, 11:14].set(params["bs"][0].astype(f32))

    return {"wslab": wslab, "hslab": hslab}


def pose_predictor_forward(feat, packed, depth_offset):
    B, nc_in = feat.shape
    depth = jnp.asarray(depth_offset, dtype=jnp.float32).reshape(1)
    feat_f32 = feat.astype(jnp.float32)
    wslab, hslab = packed["wslab"], packed["hslab"]

    vmem = pl.BlockSpec(memory_space=pltpu.MemorySpace.VMEM)
    smem = pl.BlockSpec(memory_space=pltpu.MemorySpace.SMEM)

    Bp = max(8, ((B + 7) // 8) * 8)  # sublane-align the batch
    if Bp <= _GRIDLESS_MAX_B:
        # Small batch: single-shot, gridless call (no pipeline machinery).
        if Bp != B:
            feat_f32 = jnp.pad(feat_f32, ((0, Bp - B), (0, 0)))
        out = pl.pallas_call(
            _pose_kernel,
            in_specs=[vmem, vmem, vmem, smem],
            out_specs=vmem,
            out_shape=jax.ShapeDtypeStruct((Bp, 16), jnp.float32),
        )(feat_f32, wslab, hslab, depth)
    else:
        # Large batch: stream feat/out in batch tiles; weight slabs stay
        # resident (constant block index), batch axis sharded across cores.
        Bp = ((B + _TILE_B - 1) // _TILE_B) * _TILE_B
        if Bp != B:
            feat_f32 = jnp.pad(feat_f32, ((0, Bp - B), (0, 0)))
        out = pl.pallas_call(
            _pose_kernel,
            grid=(Bp // _TILE_B,),
            in_specs=[
                pl.BlockSpec((_TILE_B, nc_in), lambda i: (i, 0)),
                pl.BlockSpec(wslab.shape, lambda i: (0, 0)),
                pl.BlockSpec(hslab.shape, lambda i: (0, 0)),
                smem,
            ],
            out_specs=pl.BlockSpec((_TILE_B, 16), lambda i: (i, 0)),
            out_shape=jax.ShapeDtypeStruct((Bp, 16), jnp.float32),
            compiler_params=pltpu.CompilerParams(
                dimension_semantics=("parallel",)),
        )(feat_f32, wslab, hslab, depth)

    out = out[:B]
    # out rows hold (x, y, z); torch.stack((x, y, z), 2) puts them as columns.
    rot = out[:, 0:9].reshape(B, 3, 3).transpose(0, 2, 1)
    trans = out[:, 9:12]
    scale = out[:, 12:15]
    return rot, trans, scale


def _reference_forward(feat, params, depth_offset):
    def lrelu(v):
        return jnp.where(v > 0, v, 0.1 * v)
    h = lrelu(feat @ params["w0"] + params["b0"])
    h = lrelu(h @ params["w1"] + params["b1"])
    h = lrelu(h @ params["w2"] + params["b2"])
    x = h @ params["wrx"] + params["brx"] + params["x_offset"]
    y = h @ params["wry"] + params["bry"] + params["y_offset"]
    x = x / jnp.maximum(jnp.linalg.norm(x, axis=1, keepdims=True), 1e-12)
    z = jnp.cross(x, y)
    z = z / jnp.maximum(jnp.linalg.norm(z, axis=1, keepdims=True), 1e-12)
    y = jnp.cross(z, x)
    y = y / jnp.maximum(jnp.linalg.norm(y, axis=1, keepdims=True), 1e-12)
    rot = jnp.stack((x, y, z), axis=2)
    t = feat @ params["wt"] + params["bt"]
    t = jnp.concatenate([t[:, :2] * 0.1, t[:, 2:3] + depth_offset], axis=1)
    s = (feat @ params["ws"] + params["bs"]) * 0.1 + 1.0
    return rot, t, s


if __name__ == "__main__":
    NC_INPUT = 64
    DEPTH_OFFSET = 10.0
    ROTATION_OFFSET = [1.0, 0.0, 0.0, 0.0, 1.0, 0.0]

    key = jax.random.PRNGKey(0)
    ks = jax.random.split(key, 16)

    def init(k, shape, scale=0.1):
        return (scale * jax.random.normal(k, shape)).astype(jnp.float32)

    params = {
        # fc_stack(nc_input, 128, 3, use_bn=False): 3 x (Linear + LeakyReLU)
        "w0": init(ks[0], (NC_INPUT, NC_HIDDEN)), "b0": init(ks[1], (1, NC_HIDDEN)),
        "w1": init(ks[2], (NC_HIDDEN, NC_HIDDEN)), "b1": init(ks[3], (1, NC_HIDDEN)),
        "w2": init(ks[4], (NC_HIDDEN, NC_HIDDEN)), "b2": init(ks[5], (1, NC_HIDDEN)),
        # final rot Linear(128, 6), split into columns 0:3 and 3:6
        "wrx": init(ks[6], (NC_HIDDEN, 3)), "brx": init(ks[7], (1, 3)),
        "wry": init(ks[8], (NC_HIDDEN, 3)), "bry": init(ks[9], (1, 3)),
        # trans_pred_layer: Linear(nc_input, 3)
        "wt": init(ks[10], (NC_INPUT, 3)), "bt": init(ks[11], (1, 3)),
        # scale_pred_layer: Linear(nc_input, 3) (use_scale=True)
        "ws": init(ks[12], (NC_INPUT, 3)), "bs": init(ks[13], (1, 3)),
        # fixed rotation offsets (non-trainable params in torch)
        "x_offset": jnp.asarray([ROTATION_OFFSET[:3]], dtype=jnp.float32),
        "y_offset": jnp.asarray([ROTATION_OFFSET[3:]], dtype=jnp.float32),
    }
    # TODO(synk): init_rot()/base_rots (kornia quaternion->rotmat) is unused by
    # forward() (n_hypo == 1) and is not implemented.

    packed = pack_pose_params(params)   # done once, not per-call

    ok = True
    # Exercise: (a) gridless small batch, (b) gridless with odd batch padding,
    # (c) gridded large batch (batch tiling + batch padding).
    for B in (8, 5, 600):
        feat = jax.random.normal(
            jax.random.fold_in(ks[14], B), (B, NC_INPUT), dtype=jnp.float32)

        rot, trans, scale = pose_predictor_forward(feat, packed, DEPTH_OFFSET)
        jax.block_until_ready((rot, trans, scale))

        rot_r, trans_r, scale_r = _reference_forward(feat, params, DEPTH_OFFSET)
        ok &= rot.shape == (B, 3, 3) and trans.shape == (B, 3) and scale.shape == (B, 3)
        ok &= bool(jnp.allclose(rot, rot_r, rtol=2e-2, atol=2e-2))
        ok &= bool(jnp.allclose(trans, trans_r, rtol=2e-2, atol=2e-2))
        ok &= bool(jnp.allclose(scale, scale_r, rtol=2e-2, atol=2e-2))

    assert ok
    print("KERNEL_OK")
</pallas_src>

<mosaic_0001>
module attributes {stable_mosaic.version = 11 : i64} {
  func.func @_pose_kernel(%arg0: memref<8x64xf32, #tpu.memory_space<vmem>>, %arg1: memref<328x128xf32, #tpu.memory_space<vmem>>, %arg2: memref<136x16xf32, #tpu.memory_space<vmem>>, %arg3: memref<1xf32, #tpu.memory_space<smem>>, %arg4: memref<8x16xf32, #tpu.memory_space<vmem>>) attributes {dimension_semantics = [], scalar_prefetch = 0 : i64, scratch_operands = 0 : i64, tpu.core_type = #tpu.core_type<tc>} {
    %c0 = arith.constant 0 : index
    %c0_0 = arith.constant 0 : index
    %0 = vector.load %arg0[%c0, %c0_0] : memref<8x64xf32, #tpu.memory_space<vmem>>, vector<8x64xf32>
    %c0_1 = arith.constant 0 : index
    %c0_2 = arith.constant 0 : index
    %1 = vector.load %arg1[%c0_1, %c0_2] : memref<328x128xf32, #tpu.memory_space<vmem>>, vector<64x128xf32>
    %c64 = arith.constant 64 : index
    %c0_3 = arith.constant 0 : index
    %2 = vector.load %arg1[%c64, %c0_3] : memref<328x128xf32, #tpu.memory_space<vmem>>, vector<128x128xf32>
    %c192 = arith.constant 192 : index
    %c0_4 = arith.constant 0 : index
    %3 = vector.load %arg1[%c192, %c0_4] : memref<328x128xf32, #tpu.memory_space<vmem>>, vector<128x128xf32>
    %c320 = arith.constant 320 : index
    %c0_5 = arith.constant 0 : index
    %4 = vector.load %arg1[%c320, %c0_5] : memref<328x128xf32, #tpu.memory_space<vmem>>, vector<1x128xf32>
    %c321 = arith.constant 321 : index
    %c0_6 = arith.constant 0 : index
    %5 = vector.load %arg1[%c321, %c0_6] : memref<328x128xf32, #tpu.memory_space<vmem>>, vector<1x128xf32>
    %c322 = arith.constant 322 : index
    %c0_7 = arith.constant 0 : index
    %6 = vector.load %arg1[%c322, %c0_7] : memref<328x128xf32, #tpu.memory_space<vmem>>, vector<1x128xf32>
    %cst = arith.constant dense<0.000000e+00> : vector<8x128xf32>
    %7 = tpu.matmul %0, %1, %cst {dimension_numbers = #tpu.dot_dimension_numbers<[1], [0], [0], [1], [0, 0, 1, 1], [], []>} : vector<8x64xf32>, vector<64x128xf32>, vector<8x128xf32> -> vector<8x128xf32>
    %8 = vector.broadcast %4 : vector<1x128xf32> to vector<8x128xf32>
    %9 = arith.addf %7, %8 : vector<8x128xf32>
    %cst_8 = arith.constant 0.000000e+00 : f32
    %10 = vector.broadcast %cst_8 : f32 to vector<8x128xf32>
    %11 = arith.cmpf ogt, %9, %10 : vector<8x128xf32>
    %cst_9 = arith.constant 1.000000e-01 : f32
    %12 = vector.broadcast %cst_9 : f32 to vector<8x128xf32>
    %13 = arith.mulf %12, %9 : vector<8x128xf32>
    %14 = arith.select %11, %9, %13 : vector<8x128xi1>, vector<8x128xf32>
    %cst_10 = arith.constant dense<0.000000e+00> : vector<8x128xf32>
    %15 = tpu.matmul %14, %2, %cst_10 {dimension_numbers = #tpu.dot_dimension_numbers<[1], [0], [0], [1], [0, 0, 1, 1], [], []>} : vector<8x128xf32>, vector<128x128xf32>, vector<8x128xf32> -> vector<8x128xf32>
    %16 = vector.broadcast %5 : vector<1x128xf32> to vector<8x128xf32>
    %17 = arith.addf %15, %16 : vector<8x128xf32>
    %cst_11 = arith.constant 0.000000e+00 : f32
    %18 = vector.broadcast %cst_11 : f32 to vector<8x128xf32>
    %19 = arith.cmpf ogt, %17, %18 : vector<8x128xf32>
    %cst_12 = arith.constant 1.000000e-01 : f32
    %20 = vector.broadcast %cst_12 : f32 to vector<8x128xf32>
    %21 = arith.mulf %20, %17 : vector<8x128xf32>
    %22 = arith.select %19, %17, %21 : vector<8x128xi1>, vector<8x128xf32>
    %cst_13 = arith.constant dense<0.000000e+00> : vector<8x128xf32>
    %23 = tpu.matmul %22, %3, %cst_13 {dimension_numbers = #tpu.dot_dimension_numbers<[1], [0], [0], [1], [0, 0, 1, 1], [], []>} : vector<8x128xf32>, vector<128x128xf32>, vector<8x128xf32> -> vector<8x128xf32>
    %24 = vector.broadcast %6 : vector<1x128xf32> to vector<8x128xf32>
    %25 = arith.addf %23, %24 : vector<8x128xf32>
    %cst_14 = arith.constant 0.000000e+00 : f32
    %26 = vector.broadcast %cst_14 : f32 to vector<8x128xf32>
    %27 = arith.cmpf ogt, %25, %26 : vector<8x128xf32>
    %cst_15 = arith.constant 1.000000e-01 : f32
    %28 = vector.broadcast %cst_15 : f32 to vector<8x128xf32>
    %29 = arith.mulf %28, %25 : vector<8x128xf32>
    %30 = arith.select %27, %25, %29 : vector<8x128xi1>, vector<8x128xf32>
    %c0_16 = arith.constant 0 : index
    %c0_17 = arith.constant 0 : index
    %31 = vector.load %arg2[%c0_16, %c0_17] : memref<136x16xf32, #tpu.memory_space<vmem>>, vector<128x8xf32>
    %c0_18 = arith.constant 0 : index
    %c8 = arith.constant 8 : index
    %32 = vector.load %arg2[%c0_18, %c8] : memref<136x16xf32, #tpu.memory_space<vmem>>, vector<64x8xf32>
    %c128 = arith.constant 128 : index
    %c0_19 = arith.constant 0 : index
    %33 = vector.load %arg2[%c128, %c0_19] : memref<136x16xf32, #tpu.memory_space<vmem>>, vector<1x8xf32>
    %c128_20 = arith.constant 128 : index
    %c8_21 = arith.constant 8 : index
    %34 = vector.load %arg2[%c128_20, %c8_21] : memref<136x16xf32, #tpu.memory_space<vmem>>, vector<1x8xf32>
    %cst_22 = arith.constant dense<0.000000e+00> : vector<8x8xf32>
    %35 = tpu.matmul %30, %31, %cst_22 {dimension_numbers = #tpu.dot_dimension_numbers<[1], [0], [0], [1], [0, 0, 1, 1], [], []>} : vector<8x128xf32>, vector<128x8xf32>, vector<8x8xf32> -> vector<8x8xf32>
    %36 = vector.broadcast %33 : vector<1x8xf32> to vector<8x8xf32>
    %37 = arith.addf %35, %36 : vector<8x8xf32>
    %cst_23 = arith.constant dense<0.000000e+00> : vector<8x8xf32>
    %38 = tpu.matmul %0, %32, %cst_23 {dimension_numbers = #tpu.dot_dimension_numbers<[1], [0], [0], [1], [0, 0, 1, 1], [], []>} : vector<8x64xf32>, vector<64x8xf32>, vector<8x8xf32> -> vector<8x8xf32>
    %39 = vector.broadcast %34 : vector<1x8xf32> to vector<8x8xf32>
    %40 = arith.addf %38, %39 : vector<8x8xf32>
    %41 = vector.extract_strided_slice %37 {offsets = [0, 0], sizes = [8, 3], strides = [1, 1]} : vector<8x8xf32> to vector<8x3xf32>
    %42 = vector.extract_strided_slice %37 {offsets = [0, 3], sizes = [8, 3], strides = [1, 1]} : vector<8x8xf32> to vector<8x3xf32>
    %43 = vector.extract_strided_slice %40 {offsets = [0, 0], sizes = [8, 3], strides = [1, 1]} : vector<8x8xf32> to vector<8x3xf32>
    %44 = vector.extract_strided_slice %40 {offsets = [0, 3], sizes = [8, 3], strides = [1, 1]} : vector<8x8xf32> to vector<8x3xf32>
    %45 = arith.mulf %41, %41 : vector<8x3xf32>
    %cst_24 = arith.constant dense<0.000000e+00> : vector<8xf32>
    %46 = vector.multi_reduction <add>, %45, %cst_24 [1] : vector<8x3xf32> to vector<8xf32>
    %47 = vector.shape_cast %46 : vector<8xf32> to vector<8x1xf32>
    %48 = math.sqrt %47 : vector<8x1xf32>
    %cst_25 = arith.constant 9.99999996E-13 : f32
    %49 = vector.broadcast %cst_25 : f32 to vector<8x1xf32>
    %50 = arith.maximumf %48, %49 : vector<8x1xf32>
    %51 = vector.broadcast %50 : vector<8x1xf32> to vector<8x3xf32>
    %52 = arith.divf %41, %51 : vector<8x3xf32>
    %53 = vector.extract_strided_slice %52 {offsets = [0, 0], sizes = [8, 1], strides = [1, 1]} : vector<8x3xf32> to vector<8x1xf32>
    %54 = vector.extract_strided_slice %52 {offsets = [0, 1], sizes = [8, 1], strides = [1, 1]} : vector<8x3xf32> to vector<8x1xf32>
    %55 = vector.extract_strided_slice %52 {offsets = [0, 2], sizes = [8, 1], strides = [1, 1]} : vector<8x3xf32> to vector<8x1xf32>
    %56 = vector.extract_strided_slice %42 {offsets = [0, 0], sizes = [8, 1], strides = [1, 1]} : vector<8x3xf32> to vector<8x1xf32>
    %57 = vector.extract_strided_slice %42 {offsets = [0, 1], sizes = [8, 1], strides = [1, 1]} : vector<8x3xf32> to vector<8x1xf32>
    %58 = vector.extract_strided_slice %42 {offsets = [0, 2], sizes = [8, 1], strides = [1, 1]} : vector<8x3xf32> to vector<8x1xf32>
    %59 = arith.mulf %54, %58 : vector<8x1xf32>
    %60 = arith.mulf %55, %57 : vector<8x1xf32>
    %61 = arith.subf %59, %60 : vector<8x1xf32>
    %62 = arith.mulf %55, %56 : vector<8x1xf32>
    %63 = arith.mulf %53, %58 : vector<8x1xf32>
    %64 = arith.subf %62, %63 : vector<8x1xf32>
    %65 = arith.mulf %53, %57 : vector<8x1xf32>
    %66 = arith.mulf %54, %56 : vector<8x1xf32>
    %67 = arith.subf %65, %66 : vector<8x1xf32>
    %68 = tpu.concatenate %61, %64, %67 in 1 : vector<8x1xf32>, vector<8x1xf32>, vector<8x1xf32> -> vector<8x3xf32>
    %69 = arith.mulf %68, %68 : vector<8x3xf32>
    %cst_26 = arith.constant dense<0.000000e+00> : vector<8xf32>
    %70 = vector.multi_reduction <add>, %69, %cst_26 [1] : vector<8x3xf32> to vector<8xf32>
    %71 = vector.shape_cast %70 : vector<8xf32> to vector<8x1xf32>
    %72 = math.sqrt %71 : vector<8x1xf32>
    %cst_27 = arith.constant 9.99999996E-13 : f32
    %73 = vector.broadcast %cst_27 : f32 to vector<8x1xf32>
    %74 = arith.maximumf %72, %73 : vector<8x1xf32>
    %75 = vector.broadcast %74 : vector<8x1xf32> to vector<8x3xf32>
    %76 = arith.divf %68, %75 : vector<8x3xf32>
    %77 = vector.extract_strided_slice %76 {offsets = [0, 0], sizes = [8, 1], strides = [1, 1]} : vector<8x3xf32> to vector<8x1xf32>
    %78 = vector.extract_strided_slice %76 {offsets = [0, 1], sizes = [8, 1], strides = [1, 1]} : vector<8x3xf32> to vector<8x1xf32>
    %79 = vector.extract_strided_slice %76 {offsets = [0, 2], sizes = [8, 1], strides = [1, 1]} : vector<8x3xf32> to vector<8x1xf32>
    %80 = vector.extract_strided_slice %52 {offsets = [0, 0], sizes = [8, 1], strides = [1, 1]} : vector<8x3xf32> to vector<8x1xf32>
    %81 = vector.extract_strided_slice %52 {offsets = [0, 1], sizes = [8, 1], strides = [1, 1]} : vector<8x3xf32> to vector<8x1xf32>
    %82 = vector.extract_strided_slice %52 {offsets = [0, 2], sizes = [8, 1], strides = [1, 1]} : vector<8x3xf32> to vector<8x1xf32>
    %83 = arith.mulf %78, %82 : vector<8x1xf32>
    %84 = arith.mulf %79, %81 : vector<8x1xf32>
    %85 = arith.subf %83, %84 : vector<8x1xf32>
    %86 = arith.mulf %79, %80 : vector<8x1xf32>
    %87 = arith.mulf %77, %82 : vector<8x1xf32>
    %88 = arith.subf %86, %87 : vector<8x1xf32>
    %89 = arith.mulf %77, %81 : vector<8x1xf32>
    %90 = arith.mulf %78, %80 : vector<8x1xf32>
    %91 = arith.subf %89, %90 : vector<8x1xf32>
    %92 = tpu.concatenate %85, %88, %91 in 1 : vector<8x1xf32>, vector<8x1xf32>, vector<8x1xf32> -> vector<8x3xf32>
    %93 = arith.mulf %92, %92 : vector<8x3xf32>
    %cst_28 = arith.constant dense<0.000000e+00> : vector<8xf32>
    %94 = vector.multi_reduction <add>, %93, %cst_28 [1] : vector<8x3xf32> to vector<8xf32>
    %95 = vector.shape_cast %94 : vector<8xf32> to vector<8x1xf32>
    %96 = math.sqrt %95 : vector<8x1xf32>
    %cst_29 = arith.constant 9.99999996E-13 : f32
    %97 = vector.broadcast %cst_29 : f32 to vector<8x1xf32>
    %98 = arith.maximumf %96, %97 : vector<8x1xf32>
    %99 = vector.broadcast %98 : vector<8x1xf32> to vector<8x3xf32>
    %100 = arith.divf %92, %99 : vector<8x3xf32>
    %c0_30 = arith.constant 0 : index
    %101 = memref.load %arg3[%c0_30] : memref<1xf32, #tpu.memory_space<smem>>
    %102 = vector.extract_strided_slice %43 {offsets = [0, 0], sizes = [8, 2], strides = [1, 1]} : vector<8x3xf32> to vector<8x2xf32>
    %cst_31 = arith.constant 1.000000e-01 : f32
    %103 = vector.broadcast %cst_31 : f32 to vector<8x2xf32>
    %104 = arith.mulf %102, %103 : vector<8x2xf32>
    %105 = vector.extract_strided_slice %43 {offsets = [0, 2], sizes = [8, 1], strides = [1, 1]} : vector<8x3xf32> to vector<8x1xf32>
    %106 = vector.broadcast %101 : f32 to vector<8x1xf32>
    %107 = arith.addf %105, %106 : vector<8x1xf32>
    %108 = tpu.concatenate %104, %107 in 1 : vector<8x2xf32>, vector<8x1xf32> -> vector<8x3xf32>
    %cst_32 = arith.constant 1.000000e-01 : f32
    %109 = vector.broadcast %cst_32 : f32 to vector<8x3xf32>
    %110 = arith.mulf %44, %109 : vector<8x3xf32>
    %cst_33 = arith.constant 1.000000e+00 : f32
    %111 = vector.broadcast %cst_33 : f32 to vector<8x3xf32>
    %112 = arith.addf %110, %111 : vector<8x3xf32>
    %cst_34 = arith.constant 0.000000e+00 : f32
    %113 = vector.broadcast %cst_34 : f32 to vector<8x1xf32>
    %114 = tpu.concatenate %52, %100, %76, %108, %112, %113 in 1 : vector<8x3xf32>, vector<8x3xf32>, vector<8x3xf32>, vector<8x3xf32>, vector<8x3xf32>, vector<8x1xf32> -> vector<8x16xf32>
    %c0_35 = arith.constant 0 : index
    %c0_36 = arith.constant 0 : index
    %115 = vector.load %arg4[%c0_35, %c0_36] : memref<8x16xf32, #tpu.memory_space<vmem>>, vector<8x16xf32>
    tpu.vector_store %arg4[%c0_35, %c0_36], %114 {strides = array<i32>} : memref<8x16xf32, #tpu.memory_space<vmem>>, vector<8x16xf32>,
    return
  }
}

</mosaic_0001>

<bundles_post_ra>
// kernel: tpu_custom_call.1
= control target key start
LH: loop header
LB: loop body
LE: loop exit
PB: predicated region body
PF: predicated region fallthrough
CT: control target
= control target key end

     0   :  { %10 = vsyncpa [#allocation4], 0  ;;  %s1340_s0 = inlined_call_operand.vmem [shape: f32[8,64], index: 0, kind: input, shape index: {}]   ;;  %s1341_s1 = inlined_call_operand.hbm [shape: f32[328,128], index: 1, kind: input, shape index: {}]   ;;  %s1342_s2 = inlined_call_operand.vmem [shape: f32[136,16], index: 2, kind: input, shape index: {}]   ;;  %s1343_s3 = inlined_call_operand.<no memory space> [shape: f32[1], index: 3, kind: input, shape index: {}]   ;;  %s1344_s4 = inlined_call_operand.hbm [shape: f32[8,16], index: 4, kind: output, shape index: {}]  }
   0x1   :  { %11 = vsyncpa [#allocation5], 0  ;;  %s1093_s15 = smov [#allocation3]   ;;  %s1045_s19 = scalar_lea.hbm %s1341_s1, 5248 }
   0x2   :  { %s19_s16 = sshll.u32 %s1093_s15, 4  ;;  %p1046_p0 = scmp.ne.s32.totalorder %s1341_s1, %s1045_s19  ;;  %s20_s16 = int_to_ptr.vmem [resolvable:$true] %s19_s16 }
   0x3   :  { %p1049_p1 = scmp.lt.u32.totalorder %s1045_s19, %s1341_s1 }
   0x5   :  { %p1051_p2 = pnand %p1049_p1, %p1046_p0 }
   0x7   :  { %1054 = shalt.err (!%p1051_p2)
}
   0x8   :  { %s1055_s24 = scalar_lea.vmem %s20_s16, 5248  ;;  %p1060_p4 = scmp.lt.s32.totalorder %s20_s16, %s20_s16 }
   0x9   :  { %p1056_p3 = scmp.ne.s32.totalorder %s20_s16, %s1055_s24  ;;  %p1061_p5 = scmp.lt.s32.totalorder %s1055_s24, %s1055_s24 }
   0xb   :  { %p1062_p6 = por %p1061_p5, %p1060_p4 }
   0xd   :  { %p1063_p7 = pnand %p1062_p6, %p1056_p3 }
   0xf   :  { %1066 = shalt.err (!%p1063_p7)
}
  0x10   :  { %s1094_s25 = smov 128   ;;  %s1095_s26 = smov 8  }
  0x11   :  { %25 = dma.hbm_to_vmem [thread:$0]  %s1341_s1, 5248, %s20_s16, [#allocation4], %s1094_s25, %s1094_s25, %s1095_s26  }
  0x12   :  { %1089 = dma.done.wait [#allocation4], 5248  }
  0x13   :  { %1090 = vsyncadd [#allocation4], 4294962048  ;;  %v1096_v0 = vmov 0.0|0.0   ;;  %vm1097_vm0 = vmmov 0   ;;  %v1098_v1 = vmov 0.0   ;;  %v34_v2 = vld [vmem:[#allocation3] sm:$0xff] }
  0x14   :  { %900 = vmatprep.subr.bf16.mxu0 %v1096_v0  ;;  %773 = vmatprep.mubr.msk.f32.mxu0 %vm1097_vm0, %v1098_v1  ;;  %v35_v3 = vld [vmem:[#allocation3 + $0x8] sm:$0xff]  ;;  %v36_v4 = vld [vmem:[#allocation3 + $0x10] sm:$0xff]  ;;  %v37_v6 = vld [vmem:[#allocation3 + $0x18] sm:$0xff]  ;;  %vm81_vm1 = vcmask 523264   ;;  %vm510_vm5 = vcmask 23552   ;;  %s1099_s9 = smov 123  }
  0x15   :  { %912 = vmatprep.subr.bf16.mxu1 %v1096_v0  ;;  %808 = vmatprep.mubr.msk.f32.mxu1 %vm1097_vm0, %v1098_v1  ;;  %v901_v5 = vpack.c.bf16 %v35_v3, %v34_v2  ;;  %v904_v7 = vpack.c.bf16 %v37_v6, %v36_v4  ;;  %v42_v8 = vld [vmem:[#allocation3 + $0x40] sm:$0xff]  ;;  %v43_v9 = vld [vmem:[#allocation3 + $0x48] sm:$0xff]  ;;  %v44_v10 = vld [vmem:[#allocation3 + $0x50] sm:$0xff]  ;;  %s1100_s10 = smov 124   ;;  %s1101_s11 = smov 127   ;;  %vm562_vm8 = vcmask 7168  }
  0x16   :  { %v38_v11 = vld [vmem:[#allocation3 + $0x20] sm:$0xff]  ;;  %v39_v12 = vld [vmem:[#allocation3 + $0x28] sm:$0xff]  ;;  %v913_v13 = vpack.c.bf16 %v43_v9, %v42_v8  ;;  %v45_v14 = vld [vmem:[#allocation3 + $0x58] sm:$0xff]  ;;  %s1102_s12 = smov 126   ;;  %s1104_s13 = smov 120   ;;  %vm564_vm9 = vcmask 15360  }
  0x17   :  { %902 = vmatpush3.bf16.msra.mxu0 %v901_v5  ;;  %v916_v15 = vpack.c.bf16 %v45_v14, %v44_v10  ;;  %v907_v16 = vpack.c.bf16 %v39_v12, %v38_v11  ;;  %v46_v17 = vld [vmem:[#allocation3 + $0x60] sm:$0xff]  ;;  %v47_v18 = vld [vmem:[#allocation3 + $0x68] sm:$0xff]  ;;  %v40_v19 = vld [vmem:[#allocation3 + $0x30] sm:$0xff]  ;;  %s1105_s14 = smov 1   ;;  %s1106_s15 = smov 6   ;;  %vm657_vm14 = vcmask 48128  }
  0x18   :  { %903 = vmatprep.subr.bf16.mxu0 %v1096_v0  ;;  %914 = vmatpush3.bf16.msra.mxu1 %v913_v13  ;;  %v41_v20 = vld [vmem:[#allocation3 + $0x38] sm:$0xff]  ;;  %v919_v21 = vpack.c.bf16 %v47_v18, %v46_v17  ;;  %v48_v23 = vld [vmem:[#allocation3 + $0x70] sm:$0xff]  ;;  %v1161_v26 = vld [vmem:[%s1340_s0] sm:$0xff]  ;;  %s1107_s18 = smov 9   ;;  %vm659_vm15 = vcmask 72704   ;;  %s1109_s19 = smov [#allocation6]  }
  0x19   :  { %915 = vmatprep.subr.bf16.mxu1 %v1096_v0  ;;  %v910_v22 = vpack.c.bf16 %v41_v20, %v40_v19  ;;  %v49_v24 = vld [vmem:[#allocation3 + $0x78] sm:$0xff]  ;;  %v50_v27 = vld [vmem:[#allocation3 + $0x80] sm:$0xff]  ;;  %v51_v28 = vld [vmem:[#allocation3 + $0x88] sm:$0xff]  ;;  %s673_s20 = sshll.u32 %s1109_s19, 4  ;;  %s674_s20 = int_to_ptr.vmem [resolvable:$true] %s673_s20 }
  0x1a   :  { %v922_v25 = vpack.c.bf16 %v49_v24, %v48_v23  ;;  %v925_v29 = vpack.c.bf16 %v51_v28, %v50_v27  ;;  %v52_v30 = vld [vmem:[#allocation3 + $0x90] sm:$0xff]  ;;  %v53_v31 = vld [vmem:[#allocation3 + $0x98] sm:$0xff]  ;;  %v54_v33 = vld [vmem:[#allocation3 + $0xa0] sm:$0xff]  ;;  %s1067_s21 = scalar_lea.vmem %s674_s20, 128  ;;  %p1072_p9 = scmp.lt.s32.totalorder %s674_s20, %s674_s20 }
  0x1b   :  { %905 = vmatpush3.bf16.msra.mxu0 %v904_v7  ;;  %v928_v32 = vpack.c.bf16 %v53_v31, %v52_v30  ;;  %v55_v34 = vld [vmem:[#allocation3 + $0xa8] sm:$0xff]  ;;  %v56_v36 = vld [vmem:[#allocation3 + $0xb0] sm:$0xff]  ;;  %v57_v37 = vld [vmem:[#allocation3 + $0xb8] sm:$0xff]  ;;  %p1068_p8 = scmp.ne.s32.totalorder %s674_s20, %s1067_s21  ;;  %p1073_p10 = scmp.lt.s32.totalorder %s1067_s21, %s1067_s21 }
  0x1c   :  { %906 = vmatprep.subr.bf16.mxu0 %v1096_v0  ;;  %917 = vmatpush3.bf16.msra.mxu1 %v916_v15  ;;  %v931_v35 = vpack.c.bf16 %v55_v34, %v54_v33  ;;  %v934_v38 = vpack.c.bf16 %v57_v37, %v56_v36  ;;  %v58_v39 = vld [vmem:[#allocation3 + $0xc0] sm:$0xff]  ;;  %v59_v40 = vld [vmem:[#allocation3 + $0xc8] sm:$0xff]  ;;  %v60_v41 = vld [vmem:[#allocation3 + $0xd0] sm:$0xff] }
  0x1d   :  { %918 = vmatprep.subr.bf16.mxu1 %v1096_v0  ;;  %v937_v42 = vpack.c.bf16 %v59_v40, %v58_v39  ;;  %v61_v43 = vld [vmem:[#allocation3 + $0xd8] sm:$0xff]  ;;  %v62_v45 = vld [vmem:[#allocation3 + $0xe0] sm:$0xff]  ;;  %v63_v46 = vld [vmem:[#allocation3 + $0xe8] sm:$0xff]  ;;  %p1074_p11 = por %p1073_p10, %p1072_p9 }
  0x1e   :  { %v940_v44 = vpack.c.bf16 %v61_v43, %v60_v41  ;;  %v943_v47 = vpack.c.bf16 %v63_v46, %v62_v45  ;;  %v64_v48 = vld [vmem:[#allocation3 + $0xf0] sm:$0xff]  ;;  %v65_v49 = vld [vmem:[#allocation3 + $0xf8] sm:$0xff]  ;;  %v66_v51 = vld [vmem:[#allocation3 + $0x100] sm:$0xff] }
  0x1f   :  { %908 = vmatpush3.bf16.msra.mxu0 %v907_v16  ;;  %v946_v50 = vpack.c.bf16 %v65_v49, %v64_v48  ;;  %v67_v52 = vld [vmem:[#allocation3 + $0x108] sm:$0xff]  ;;  %v68_v54 = vld [vmem:[#allocation3 + $0x110] sm:$0xff]  ;;  %v69_v55 = vld [vmem:[#allocation3 + $0x118] sm:$0xff]  ;;  %p1075_p12 = pnand %p1074_p11, %p1068_p8 }
  0x20   :  { %909 = vmatprep.subr.bf16.mxu0 %v1096_v0  ;;  %920 = vmatpush3.bf16.msra.mxu1 %v919_v21  ;;  %v949_v53 = vpack.c.bf16 %v67_v52, %v66_v51  ;;  %v952_v56 = vpack.c.bf16 %v69_v55, %v68_v54  ;;  %v70_v57 = vld [vmem:[#allocation3 + $0x120] sm:$0xff]  ;;  %v71_v58 = vld [vmem:[#allocation3 + $0x128] sm:$0xff]  ;;  %v72_v4 = vld [vmem:[#allocation3 + $0x130] sm:$0xff] }
  0x21   :  { %921 = vmatprep.subr.bf16.mxu1 %v1096_v0  ;;  %v955_v59 = vpack.c.bf16 %v71_v58, %v70_v57  ;;  %v682_v60 = vld [vmem:[#allocation3 + $0x140] ss:$0 sm:$0xff]  ;;  %v73_v5 = vld [vmem:[#allocation3 + $0x138] sm:$0xff]  ;;  %v1192_v8 = vld [vmem:[%s1342_s2 + $0x8] sm:$0xff] }
  0x22   :  { %v958_v6 = vpack.c.bf16 %v73_v5, %v72_v4  ;;  %v1187_v7 = vld [vmem:[%s1342_s2] sm:$0xff]  ;;  %v1197_v9 = vld [vmem:[%s1342_s2 + $0x10] sm:$0xff]  ;;  %v1204_v11 = vld [vmem:[%s1342_s2 + $0x18] sm:$0xff] }
  0x23   :  { %911 = vmatpush3.bf16.msra.mxu0 %v910_v22  ;;  %v961_v10 = vpack.c.bf16 %v1192_v8, %v1187_v7  ;;  %v964_v12 = vpack.c.bf16 %v1204_v11, %v1197_v9  ;;  %v1212_v13 = vld [vmem:[%s1342_s2 + $0x20] sm:$0xff]  ;;  %v1217_v14 = vld [vmem:[%s1342_s2 + $0x28] sm:$0xff]  ;;  %v1225_v16 = vld [vmem:[%s1342_s2 + $0x30] sm:$0xff] }
  0x24   :  { %936 = vmatprep.subr.bf16.mxu0 %v1096_v0  ;;  %923 = vmatpush3.bf16.msra.mxu1 %v922_v25  ;;  %v967_v15 = vpack.c.bf16 %v1217_v14, %v1212_v13  ;;  %v1230_v17 = vld [vmem:[%s1342_s2 + $0x38] sm:$0xff]  ;;  %v320_v19 = vld [vmem:[%s1342_s2 + $0x40] sm:$0xff]  ;;  %v321_v20 = vld [vmem:[%s1342_s2 + $0x48] sm:$0xff] }
  0x25   :  { %924 = vmatprep.subr.bf16.mxu1 %v1096_v0  ;;  %v970_v18 = vpack.c.bf16 %v1230_v17, %v1225_v16  ;;  %v973_v21 = vpack.c.bf16 %v321_v20, %v320_v19  ;;  %v322_v22 = vld [vmem:[%s1342_s2 + $0x50] sm:$0xff]  ;;  %v323_v23 = vld [vmem:[%s1342_s2 + $0x58] sm:$0xff]  ;;  %v324_v25 = vld [vmem:[%s1342_s2 + $0x60] sm:$0xff] }
  0x26   :  { %774 = vmatmul.mubr.msk.f32.vlgmr.msra.gmra.mrb[0].mxu0 %vm81_vm1, %v1161_v26  ;;  %v976_v24 = vpack.c.bf16 %v323_v23, %v322_v22  ;;  %v325_v27 = vld [vmem:[%s1342_s2 + $0x68] sm:$0xff]  ;;  %v327_v36 = vld [vmem:[%s1342_s2 + $0x78] sm:$0xff] }
  0x27   :  { %843 = vmatprep.mubr.msk.f32.mxu0 %vm1097_vm0, %v1098_v1  ;;  %938 = vmatpush3.bf16.msra.mxu0 %v937_v42  ;;  %v979_v28 = vpack.c.bf16 %v325_v27, %v324_v25 }
  0x28   :  { %926 = vmatpush3.bf16.msra.mxu1 %v925_v29  ;;  %939 = vmatprep.subr.bf16.mxu0 %v1096_v0  ;;  %v684_v29 = vld [vmem:[#allocation3 + $0x141] ss:$0 sm:$0xff] }
  0x29   :  { %927 = vmatprep.subr.bf16.mxu1 %v1096_v0 }
  0x2b   :  { %941 = vmatpush3.bf16.msra.mxu0 %v940_v44 }
  0x2c   :  { %929 = vmatpush3.bf16.msra.mxu1 %v928_v32  ;;  %942 = vmatprep.subr.bf16.mxu0 %v1096_v0 }
  0x2d   :  { %930 = vmatprep.subr.bf16.mxu1 %v1096_v0 }
  0x2f   :  { %944 = vmatpush3.bf16.msra.mxu0 %v943_v47 }
  0x30   :  { %932 = vmatpush3.bf16.msra.mxu1 %v931_v35  ;;  %945 = vmatprep.subr.bf16.mxu0 %v1096_v0  ;;  %v326_v35 = vld [vmem:[%s1342_s2 + $0x70] sm:$0xff] }
  0x31   :  { %933 = vmatprep.subr.bf16.mxu1 %v1096_v0  ;;  %v982_v37 = vpack.c.bf16 %v327_v36, %v326_v35 }
  0x33   :  { %947 = vmatpush3.bf16.msra.mxu0 %v946_v50 }
  0x34   :  { %935 = vmatpush3.bf16.msra.mxu1 %v934_v38  ;;  %948 = vmatprep.subr.bf16.mxu0 %v1096_v0  ;;  %v685_v38 = vld [vmem:[#allocation3 + $0x142] ss:$0 sm:$0xff] }
  0x35   :  { %960 = vmatprep.subr.bf16.mxu1 %v1096_v0 }
  0x37   :  { %950 = vmatpush3.bf16.msra.mxu0 %v949_v53 }
  0x38   :  { %951 = vmatprep.subr.bf16.mxu0 %v1096_v0 }
  0x3b   :  { %953 = vmatpush3.bf16.msra.mxu0 %v952_v56 }
  0x3c   :  { %954 = vmatprep.subr.bf16.mxu0 %v1096_v0 }
  0x3f   :  { %956 = vmatpush3.bf16.msra.mxu0 %v955_v59 }
  0x40   :  { %957 = vmatprep.subr.bf16.mxu0 %v1096_v0 }
  0x43   :  { %959 = vmatpush3.bf16.msra.mxu0 %v958_v6  ;;  %v1013_v6 = vpack.i.bf16 %v1192_v8, %v1187_v7  ;;  %v1023_v7 = vpack.i.bf16 %v1217_v14, %v1212_v13  ;;  %v1028_v8 = vpack.i.bf16 %v1230_v17, %v1225_v16 }
  0x44   :  { %984 = vmatprep.subr.bf16.mxu0 %v1096_v0 }
  0xf9   :  { %v151_v61 = vpop.f32.mrb[0].mxu0 }
  0xfa   :  { %v152_v62 = vadd.f32 %v682_v60, %v151_v61  ;;  %v775_v63 = vpop.f32.mrb[1].mxu0 }
  0xfc   :  { %v156_v2 = vmul.f32 0.1, %v152_v62  ;;  %vm155_vm2 = vcmp.gt.f32.partialorder %v152_v62, 0.0 }
  0xfe   :  { %v157_v3 = vsel %vm155_vm2, %v152_v62, %v156_v2  ;;  %vm665_vm2 = vcmask 130048  }
  0xff   :  { %809 = vmatmul.mubr.f32.vlgmr.msra.gmra.mrb[0].mxu1 %v157_v3 }
 0x100   :  { %878 = vmatprep.mubr.msk.f32.mxu1 %vm1097_vm0, %v1098_v1  ;;  %962 = vmatpush3.bf16.msra.mxu1 %v961_v10 }
 0x101   :  { %963 = vmatprep.subr.bf16.mxu1 %v1096_v0 }
 0x104   :  { %965 = vmatpush3.bf16.msra.mxu1 %v964_v12 }
 0x105   :  { %966 = vmatprep.subr.bf16.mxu1 %v1096_v0 }
 0x108   :  { %968 = vmatpush3.bf16.msra.mxu1 %v967_v15  ;;  %v1018_v15 = vpack.i.bf16 %v1204_v11, %v1197_v9 }
 0x109   :  { %969 = vmatprep.subr.bf16.mxu1 %v1096_v0 }
 0x10c   :  { %971 = vmatpush3.bf16.msra.mxu1 %v970_v18 }
 0x10d   :  { %972 = vmatprep.subr.bf16.mxu1 %v1096_v0 }
 0x110   :  { %974 = vmatpush3.bf16.msra.mxu1 %v973_v21 }
 0x111   :  { %975 = vmatprep.subr.bf16.mxu1 %v1096_v0 }
 0x114   :  { %977 = vmatpush3.bf16.msra.mxu1 %v976_v24 }
 0x115   :  { %978 = vmatprep.subr.bf16.mxu1 %v1096_v0 }
 0x118   :  { %980 = vmatpush3.bf16.msra.mxu1 %v979_v28 }
 0x119   :  { %981 = vmatprep.subr.bf16.mxu1 %v1096_v0 }
 0x11c   :  { %983 = vmatpush3.bf16.msra.mxu1 %v982_v37 }
 0x1d2   :  { %v228_v30 = vpop.f32.mrb[0].mxu1 }
 0x1d3   :  { %v229_v31 = vadd.f32 %v684_v29, %v228_v30  ;;  %v810_v32 = vpop.f32.mrb[1].mxu1 }
 0x1d5   :  { %vm232_vm3 = vcmp.gt.f32.partialorder %v229_v31, 0.0  ;;  %v233_v33 = vmul.f32 0.1, %v229_v31 }
 0x1d7   :  { %v234_v34 = vsel %vm232_vm3, %v229_v31, %v233_v33 }
 0x1d8   :  { %844 = vmatmul.mubr.f32.vlgmr.msra.gmra.mrb[2].mxu0 %v234_v34 }
 0x1d9   :  { %897 = vmatprep.mubr.msk.f32.mxu0 %vm1097_vm0, %v1098_v1  ;;  %v1268_v1 = vld [vmem:[%s1342_s2 + $0x80] ss:$0 sm:$0xff]  ;;  %s1103_s2 = smov 2   ;;  %vm661_vm0 = vcmask 97280  }
 0x2ab   :  { %v305_v39 = vpop.f32.mrb[2].mxu0 }
 0x2ac   :  { %v306_v40 = vadd.f32 %v685_v38, %v305_v39  ;;  %v845_v41 = vpop.f32.mrb[3].mxu0 }
 0x2ae   :  { %vm309_vm4 = vcmp.gt.f32.partialorder %v306_v40, 0.0  ;;  %v310_v42 = vmul.f32 0.1, %v306_v40 }
 0x2b0   :  { %v311_v43 = vsel %vm309_vm4, %v306_v40, %v310_v42 }
 0x2b1   :  { %879 = vmatmul.mubr.f32.vlgmr.msra.gmra.mrb[2].mxu1 %v311_v43 }
 0x384   :  { %v399_v44 = vpop.f32.mrb[2].mxu1 }
 0x385   :  { %v400_v45 = vadd.f32 %v1268_v1, %v399_v44  ;;  %v880_v46 = vpop.f32.mrb[3].mxu1 }
 0x387   :  { %542 = vrot.lane.b32.xlu1 %v400_v45, %s1099_s9  ;;  %v509_v47 = vmul.f32 %v400_v45, %v400_v45 }
 0x389   :  { %v511_v48 = vsel %vm510_vm5, %v509_v47, 0.0 }
 0x38a   :  { %512 = vadd.xlane.f32.xlu0 %v511_v48 }
 0x38b   :  { %525 = vrot.lane.b32.xlu1 %v400_v45, %s1100_s10 }
 0x38f   :  { %538 = vrot.lane.b32.xlu1 %v400_v45, %s1101_s11 }
 0x3a0   :  { %529 = vrot.lane.b32.xlu0 %v400_v45, %s1102_s12 }
 0x3f9   :  { %v543_v60 = vpop.permute.xlu1 %542 }
 0x3fd   :  { %v526_v62 = vpop.permute.xlu1 %525 }
 0x401   :  { %v539_v63 = vpop.permute.xlu1 %538 }
 0x417   :  { %v513_v49 = vpop.xlane.xlu0 %512 }
 0x418   :  { %1033 = vrsqrt.f32 %v513_v49  ;;  %vm516_vm6 = vcmp.eq.f32.partialorder %v513_v49, inf  ;;  %v519_v52 = vand.u32 2147483648, %v513_v49  ;;  %vm518_vm7 = vcmp.eq.f32.partialorder %v513_v49, 0.0 }
 0x41b   :  { %v530_v58 = vpop.permute.xlu0 %529 }
 0x422   :  { %v1034_v50 = vpop.eup %1033 }
 0x423   :  { %v515_v51 = vmul.f32 %v1034_v50, %v513_v49 }
 0x425   :  { %v517_v53 = vsel %vm516_vm6, %v513_v49, %v515_v51 }
 0x426   :  { %v520_v54 = vsel %vm518_vm7, %v519_v52, %v517_v53 }
 0x427   :  { %v521_v55 = vmax.f32 %v520_v54, 1e-12 }
 0x429   :  { %1035 = vrcp.f32 %v521_v55 }
 0x433   :  { %v1036_v56 = vpop.eup %1035 }
 0x434   :  { %v1274_v57 = vmul.f32 %v1036_v56, %v400_v45 }
 0x436   :  { %v532_v59 = vmul.f32 %v530_v58, %v1274_v57  ;;  %v545_v61 = vmul.f32 %v543_v60, %v1274_v57  ;;  %v528_v2 = vmul.f32 %v526_v62, %v1274_v57  ;;  %v541_v5 = vmul.f32 %v539_v63, %v1274_v57 }
 0x438   :  { %534 = vrot.lane.b32.xlu1 %v532_v59, %s1101_s11 }
 0x43c   :  { %547 = vrot.lane.b32.xlu1 %v545_v61, %s1103_s2 }
 0x4aa   :  { %v535_v3 = vpop.permute.xlu1 %534 }
 0x4ab   :  { %v537_v4 = vsub.f32 %v528_v2, %v535_v3  ;;  %v636_v2 = vstv %s1343_s3  ;;  %s1108_s3 = smov 3  }
 0x4ad   :  { %559 = vrot.lane.b32.xlu0 %v537_v4, %s1103_s2  ;;  %552 = vrot.lane.b32.xlu1 %v537_v4, %s1101_s11 }
 0x4ae   :  { %v548_v10 = vpop.permute.xlu1 %547 }
 0x4af   :  { %v550_v12 = vsub.f32 %v541_v5, %v548_v10 }
 0x4b1   :  { %1014 = vrot.lane.b32.xlu0 %v1013_v6, %s1104_s13  ;;  %556 = vrot.lane.b32.xlu1 %v550_v12, %s1101_s11 }
 0x4b5   :  { %1019 = vrot.lane.b32.xlu0 %v1018_v15, %s1104_s13 }
 0x4b9   :  { %585 = vrot.lane.b32.xlu0 %v1274_v57, %s1105_s14 }
 0x4bd   :  { %598 = vrot.lane.b32.xlu0 %v1274_v57, %s1102_s12 }
 0x4c1   :  { %1024 = vrot.lane.b32.xlu0 %v1023_v7, %s1104_s13 }
 0x4c5   :  { %1029 = vrot.lane.b32.xlu0 %v1028_v8, %s1104_s13 }
 0x4c9   :  { %581 = vrot.lane.b32.xlu0 %v1274_v57, %s1101_s11 }
 0x4cd   :  { %594 = vrot.lane.b32.xlu0 %v1274_v57, %s1103_s2 }
 0x51f   :  { %v560_v9 = vpop.permute.xlu0 %559  ;;  %v553_v11 = vpop.permute.xlu1 %552 }
 0x523   :  { %v1015_v18 = vpop.permute.xlu0 %1014  ;;  %v557_v19 = vpop.permute.xlu1 %556 }
 0x524   :  { %v1017_v13 = vunpack.i.h.bf16 %v1015_v18  ;;  %v1016_v14 = vunpack.i.l.bf16 %v1015_v18  ;;  %v563_v20 = vsel %vm562_vm8, %v553_v11, %v557_v19 }
 0x525   :  { %v565_v16 = vsel %vm564_vm9, %v563_v20, %v560_v9 }
 0x526   :  { %v985_v17 = vpack.c.bf16 %v1017_v13, %v1016_v14  ;;  %v566_v21 = vmul.f32 %v565_v16, %v565_v16 }
 0x527   :  { %v1020_v22 = vpop.permute.xlu0 %1019 }
 0x528   :  { %v1022_v23 = vunpack.i.h.bf16 %v1020_v22  ;;  %v1021_v24 = vunpack.i.l.bf16 %v1020_v22  ;;  %v567_v25 = vsel %vm510_vm5, %v566_v21, 0.0  ;;  %986 = vmatpush3.bf16.msra.mxu0 %v985_v17 }
 0x529   :  { %568 = vadd.xlane.f32.xlu1 %v567_v25  ;;  %987 = vmatprep.subr.bf16.mxu0 %v1096_v0 }
 0x52a   :  { %v988_v27 = vpack.c.bf16 %v1022_v23, %v1021_v24 }
 0x52b   :  { %v586_v28 = vpop.permute.xlu0 %585 }
 0x52c   :  { %989 = vmatpush3.bf16.msra.mxu0 %v988_v27 }
 0x52d   :  { %990 = vmatprep.subr.bf16.mxu0 %v1096_v0 }
 0x52f   :  { %v599_v29 = vpop.permute.xlu0 %598 }
 0x533   :  { %v1025_v30 = vpop.permute.xlu0 %1024 }
 0x534   :  { %v1027_v31 = vunpack.i.h.bf16 %v1025_v30  ;;  %v1026_v32 = vunpack.i.l.bf16 %v1025_v30 }
 0x536   :  { %v991_v33 = vpack.c.bf16 %v1027_v31, %v1026_v32 }
 0x537   :  { %v1030_v34 = vpop.permute.xlu0 %1029 }
 0x538   :  { %v1032_v35 = vunpack.i.h.bf16 %v1030_v34  ;;  %v1031_v36 = vunpack.i.l.bf16 %v1030_v34  ;;  %992 = vmatpush3.bf16.msra.mxu0 %v991_v33 }
 0x539   :  { %993 = vmatprep.subr.bf16.mxu0 %v1096_v0 }
 0x53a   :  { %v994_v37 = vpack.c.bf16 %v1032_v35, %v1031_v36 }
 0x53c   :  { %995 = vmatpush3.bf16.msra.mxu0 %v994_v37 }
 0x53f   :  { %898 = vmatmul.mubr.msk.f32.vlgmr.msra.gmra.mrb[4].mxu0 %vm81_vm1, %v1161_v26  ;;  %v582_v26 = vpop.permute.xlu0 %581  ;;  %vm663_vm1 = vcmask 121856  }
 0x543   :  { %v595_v48 = vpop.permute.xlu0 %594 }
 0x5b6   :  { %v569_v38 = vpop.xlane.xlu1 %568 }
 0x5b7   :  { %1037 = vrsqrt.f32 %v569_v38  ;;  %vm572_vm10 = vcmp.eq.f32.partialorder %v569_v38, inf  ;;  %v575_v41 = vand.u32 2147483648, %v569_v38  ;;  %vm574_vm11 = vcmp.eq.f32.partialorder %v569_v38, 0.0 }
 0x5c1   :  { %v1038_v39 = vpop.eup %1037 }
 0x5c2   :  { %v571_v40 = vmul.f32 %v1038_v39, %v569_v38 }
 0x5c4   :  { %v573_v42 = vsel %vm572_vm10, %v569_v38, %v571_v40 }
 0x5c5   :  { %v576_v43 = vsel %vm574_vm11, %v575_v41, %v573_v42 }
 0x5c6   :  { %v577_v44 = vmax.f32 %v576_v43, 1e-12 }
 0x5c8   :  { %1039 = vrcp.f32 %v577_v44 }
 0x5d2   :  { %v1040_v45 = vpop.eup %1039 }
 0x5d3   :  { %v579_v46 = vmul.f32 %v1040_v45, %v565_v16 }
 0x5d5   :  { %v601_v47 = vmul.f32 %v599_v29, %v579_v46  ;;  %v588_v0 = vmul.f32 %v586_v28, %v579_v46  ;;  %v584_v49 = vmul.f32 %v582_v26, %v579_v46  ;;  %v597_v53 = vmul.f32 %v595_v48, %v579_v46 }
 0x5d7   :  { %603 = vrot.lane.b32.xlu1 %v601_v47, %s1103_s2  ;;  %590 = vrot.lane.b32.xlu0 %v588_v0, %s1101_s11 }
 0x5db   :  { %436 = vrot.lane.b32.xlu1 %v1268_v1, %s1104_s13 }
 0x5df   :  { %645 = vrot.lane.b32.xlu1 %v579_v46, %s1106_s15 }
 0x612   :  { %v505_v63 = vpop.f32.mrb[4].mxu0 }
 0x613   :  { %v899_v4 = vpop.f32.mrb[5].mxu0 }
 0x649   :  { %v591_v50 = vpop.permute.xlu0 %590  ;;  %v604_v52 = vpop.permute.xlu1 %603 }
 0x64a   :  { %v593_v51 = vsub.f32 %v584_v49, %v591_v50  ;;  %v606_v54 = vsub.f32 %v597_v53, %v604_v52 }
 0x64c   :  { %608 = vrot.lane.b32.xlu0 %v593_v51, %s1101_s11 }
 0x64d   :  { %v437_v62 = vpop.permute.xlu1 %436 }
 0x64e   :  { %v506_v3 = vadd.f32 %v505_v63, %v437_v62 }
 0x650   :  { %612 = vrot.lane.b32.xlu0 %v606_v54, %s1101_s11  ;;  %v635_v5 = vmul.f32 0.1, %v506_v3  ;;  %v637_v6 = vadd.f32 %v636_v2, %v506_v3 }
 0x651   :  { %v646_v20 = vpop.permute.xlu1 %645 }
 0x652   :  { %v638_v10 = vsel %vm564_vm9, %v635_v5, %v637_v6  ;;  %v639_v14 = vadd.f32 1.0, %v635_v5 }
 0x653   :  { %649 = vrot.lane.b32.xlu1 %v638_v10, %s1107_s18 }
 0x654   :  { %615 = vrot.lane.b32.xlu0 %v593_v51, %s1103_s2 }
 0x6be   :  { %v609_v55 = vpop.permute.xlu0 %608 }
 0x6c2   :  { %v613_v56 = vpop.permute.xlu0 %612 }
 0x6c3   :  { %v618_v1 = vsel %vm562_vm8, %v609_v55, %v613_v56 }
 0x6c5   :  { %v650_v16 = vpop.permute.xlu1 %649 }
 0x6c6   :  { %v616_v58 = vpop.permute.xlu0 %615 }
 0x6c7   :  { %v619_v59 = vsel %vm564_vm9, %v618_v1, %v616_v58 }
 0x6c8   :  { %v620_v60 = vmul.f32 %v619_v59, %v619_v59 }
 0x6ca   :  { %v621_v61 = vsel %vm510_vm5, %v620_v60, 0.0 }
 0x6cb   :  { %622 = vadd.xlane.f32.xlu0 %v621_v61 }
 0x758   :  { %v623_v12 = vpop.xlane.xlu0 %622 }
 0x759   :  { %1041 = vrsqrt.f32 %v623_v12  ;;  %vm626_vm12 = vcmp.eq.f32.partialorder %v623_v12, inf  ;;  %v629_v8 = vand.u32 2147483648, %v623_v12  ;;  %vm628_vm13 = vcmp.eq.f32.partialorder %v623_v12, 0.0 }
 0x763   :  { %v1042_v15 = vpop.eup %1041 }
 0x764   :  { %v625_v7 = vmul.f32 %v1042_v15, %v623_v12 }
 0x766   :  { %v627_v9 = vsel %vm626_vm12, %v623_v12, %v625_v7 }
 0x767   :  { %v630_v11 = vsel %vm628_vm13, %v629_v8, %v627_v9 }
 0x768   :  { %v631_v18 = vmax.f32 %v630_v11, 1e-12 }
 0x76a   :  { %1043 = vrcp.f32 %v631_v18 }
 0x774   :  { %v1044_v19 = vpop.eup %1043 }
 0x775   :  { %v633_v13 = vmul.f32 %v1044_v19, %v619_v59 }
 0x777   :  { %641 = vrot.lane.b32.xlu1 %v633_v13, %s1108_s3 }
 0x77b   :  { %653 = vrot.lane.b32.xlu1 %v639_v14, %s1107_s18 }
 0x7e9   :  { %v642_v17 = vpop.permute.xlu1 %641 }
 0x7ea   :  { %v656_v21 = vsel %vm510_vm5, %v1274_v57, %v642_v17 }
 0x7eb   :  { %v658_v22 = vsel %vm657_vm14, %v656_v21, %v646_v20 }
 0x7ec   :  { %v660_v23 = vsel %vm659_vm15, %v658_v22, %v650_v16 }
 0x7ed   :  { %v654_v24 = vpop.permute.xlu1 %653 }
 0x7ee   :  { %v662_v25 = vsel %vm661_vm0, %v660_v23, %v654_v24 }
 0x7ef   :  { %v664_v27 = vsel %vm663_vm1, %v662_v25, 0.0 }
 0x7f0   :  { %666 = vst.msk [vmem:[#allocation6] sm:$0xff] %vm665_vm2, %v664_v27 }
 0x7f1   :  { %1078 = shalt.err (!%p1075_p12)
}
 0x7f2   :  { %s1079_s24 = scalar_lea.hbm %s1344_s4, 128 }
 0x7f3   :  { %p1080_p13 = scmp.ne.s32.totalorder %s1344_s4, %s1079_s24  ;;  %p1083_p0 = scmp.lt.u32.totalorder %s1079_s24, %s1344_s4 }
 0x7f5   :  { %p1085_p1 = pnand %p1083_p0, %p1080_p13 }
 0x7f7   :  { %1088 = shalt.err (!%p1085_p1)
}
 0x7f8   :  { %676 = dma.vmem_to_hbm [thread:$0]  %s674_s20, 128, %s1344_s4, [#allocation5]  }
 0x7f9   :  { %1091 = dma.done.wait [#allocation5], 128  }
 0x7fa   :  { %1092 = vsyncadd [#allocation5], 4294967168 }
 0x7fb   :  { %680 = vsyncpa [#allocation4], 1 }
 0x7fc   :  { %681 = vsyncpa [#allocation5], 1 }

</bundles_post_ra>
